<compile_context>
chip_gen: v6e
topology: v6e:2x2x1
jax: 0.10.0
libtpu: 0.0.40
codegen_flags: <defaults>
</compile_context>

<pallas_src>
import jax
import jax.numpy as jnp
from jax.experimental import pallas as pl
from jax.experimental.pallas import tpu as pltpu


def _depthwise_next_kernel(wd_ref, wp_ref, bp_ref, x_ref, out_ref):
    """Process one batch tile (all values lane-dense with minor dim P).

    wd_ref  : VMEM [K, C, 1]        BN-scaled grouped-conv weights, K = ntap*cpg
    wp_ref  : VMEM [Co, C]          1x1 pointwise weights
    bp_ref  : VMEM [Co, 1]          pointwise bias with BN shift folded in
    x_ref   : VMEM [Bt, K, C, P]    padded + im2col'd + group-gathered input
    out_ref : VMEM [Bt, Co, P]      flattened-spatial output (P = Ho*Wo)
    """
    bt, K, C, _ = x_ref.shape

    # Tiny weight/bias tensors: load once, slice as values.
    wp = wp_ref[...]                                   # [Co, C]
    bp = bp_ref[...]                                   # [Co, 1]

    for b in range(bt):                                # unrolled (Bt is small)
        # ---- conv_depth (grouped / depthwise) with BN scale folded in ------
        # Each term is a per-use load from the ref (no padded slab in vregs).
        acc = None
        for k in range(K):
            term = wd_ref[k] * x_ref[b, k]             # [C,1] * [C,P] -> [C,P]
            acc = term if acc is None else acc + term
        # ---- conv_point_1 (1x1) + folded BN shift + ReLU --------------------
        out = None
        for c in range(C):
            term = wp[:, c:c + 1] * acc[c:c + 1, :]    # [Co,1] * [1,P] -> [Co,P]
            out = term if out is None else out + term
        # Single dense store of the whole [Co, P] slab for this image.
        out_ref[b] = jnp.maximum(out + bp, 0.0)


def depthwise_next(x, wd, bd, gamma, beta, run_mean, run_var, wp, bp,
                   *, kernel_size, stride, padding, groups, eps=1e-5,
                   batch_tile=None):
    """DepthwiseNext forward (BatchNorm2d eval mode, ReLU).

    x  : [B, C, H, W] (NCHW)
    wd : [C, C//groups, KH, KW]  conv_depth weight (PyTorch OIHW layout)
    bd : [C]                     conv_depth bias
    gamma, beta, run_mean, run_var : [C]  BatchNorm2d affine + running stats
    wp : [Co, C]                 conv_point_1 weight (1x1, squeezed)
    bp : [Co]                    conv_point_1 bias
    """
    f32 = jnp.float32
    x = x.astype(f32)
    wd = wd.astype(f32); bd = bd.astype(f32)
    gamma = gamma.astype(f32); beta = beta.astype(f32)
    run_mean = run_mean.astype(f32); run_var = run_var.astype(f32)
    wp = wp.astype(f32); bp = bp.astype(f32)

    B, C, H, W = x.shape
    KH, KW = kernel_size if isinstance(kernel_size, tuple) else (kernel_size,) * 2
    SH, SW = stride if isinstance(stride, tuple) else (stride,) * 2
    PH, PW = padding if isinstance(padding, tuple) else (padding,) * 2
    C_out = wp.shape[0]
    cpg = C // groups                       # in- and out-channels per group
    ntap = KH * KW
    K = ntap * cpg
    H_out = (H + 2 * PH - KH) // SH + 1
    W_out = (W + 2 * PW - KW) // SW + 1
    P = H_out * W_out

    # ---- fold conv_depth bias + BatchNorm (eval) fully out of the kernel ----
    # (exact algebra, done once over parameter-sized tensors, all f32/VPU-exact)
    scale = gamma / jnp.sqrt(run_var + eps)                      # [C]
    shift = scale * (bd - run_mean) + beta                       # [C]
    wd_scaled = wd * scale[:, None, None, None]                  # [C, cpg, KH, KW]
    bp_fold = bp + jnp.sum(wp * shift[None, :], axis=1)          # [Co]

    # wd_taps[k, c, 0] = wd_scaled[c, ci, kh, kw],  k = (kh*KW + kw)*cpg + ci
    wd_taps = jnp.transpose(wd_scaled.reshape(C, cpg, ntap),
                            (2, 1, 0)).reshape(K, C)[..., None]  # [K, C, 1]

    # ---- wrapper-side layout plumbing: pad + im2col + group gather ----------
    xpad = jnp.pad(x, ((0, 0), (0, 0), (PH, PH), (PW, PW)))
    taps = []
    for kh in range(KH):
        for kw in range(KW):
            plane = xpad[:, :,
                         kh:kh + SH * (H_out - 1) + 1:SH,
                         kw:kw + SW * (W_out - 1) + 1:SW]        # [B, C, Ho, Wo]
            taps.append(plane.reshape(B, C, P))
    xtaps = jnp.stack(taps, axis=1)                              # [B, ntap, C, P]
    # Grouped conv: output channel c uses input channels base[c] .. base[c]+cpg-1.
    base = (jnp.arange(C) // cpg) * cpg                          # [C]
    gather_idx = base[None, :] + jnp.arange(cpg)[:, None]        # [cpg, C]
    xcol = xtaps[:, :, gather_idx, :].reshape(B, K, C, P)        # [B, K, C, P]

    # ---- batch tiling --------------------------------------------------------
    # Default: 2-way "parallel" split so both v7x TensorCores get work; the
    # extra ~0.35us step on single-TC v5e/v6e is negligible.  Pass batch_tile=B
    # to collapse the grid entirely.
    if batch_tile is None:
        batch_tile = B // 2 if (B >= 2 and B % 2 == 0) else B
    assert B % batch_tile == 0, "batch_tile must divide B"
    num_tiles = B // batch_tile

    out_flat = pl.pallas_call(
        _depthwise_next_kernel,
        out_shape=jax.ShapeDtypeStruct((B, C_out, P), f32),
        grid_spec=pltpu.PrefetchScalarGridSpec(
            num_scalar_prefetch=0,
            grid=(num_tiles,),
            in_specs=[
                pl.BlockSpec((K, C, 1), lambda i: (0, 0, 0)),          # wd_taps
                pl.BlockSpec((C_out, C), lambda i: (0, 0)),            # wp
                pl.BlockSpec((C_out, 1), lambda i: (0, 0)),            # bp_fold
                pl.BlockSpec((batch_tile, K, C, P),
                             lambda i: (i, 0, 0, 0)),                  # xcol
            ],
            out_specs=pl.BlockSpec((batch_tile, C_out, P),
                                   lambda i: (i, 0, 0)),
        ),
        compiler_params=pltpu.CompilerParams(
            dimension_semantics=("parallel",),
        ),
    )(wd_taps, wp, bp_fold.reshape(C_out, 1), xcol)

    # Metadata-only reshape back to NCHW (contiguous).
    return out_flat.reshape(B, C_out, H_out, W_out)


def _reference(x, wd, bd, gamma, beta, run_mean, run_var, wp, bp,
               *, stride, padding, groups, eps=1e-5):
    """Pure-JAX reference reproducing the PyTorch forward (eval-mode BN)."""
    sh, sw = stride if isinstance(stride, tuple) else (stride,) * 2
    ph, pw = padding if isinstance(padding, tuple) else (padding,) * 2
    y = jax.lax.conv_general_dilated(
        x, wd, window_strides=(sh, sw),
        padding=[(ph, ph), (pw, pw)],
        dimension_numbers=("NCHW", "OIHW", "NCHW"),
        feature_group_count=groups,
        precision=jax.lax.Precision.HIGHEST)
    y = y + bd[None, :, None, None]
    y = (y - run_mean[None, :, None, None]) * (
        gamma[None, :, None, None] / jnp.sqrt(run_var[None, :, None, None] + eps))
    y = y + beta[None, :, None, None]
    z = jax.lax.conv_general_dilated(
        y, wp[:, :, None, None], window_strides=(1, 1), padding="VALID",
        dimension_numbers=("NCHW", "OIHW", "NCHW"),
        precision=jax.lax.Precision.HIGHEST)
    z = z + bp[None, :, None, None]
    return jnp.maximum(z, 0.0)


if __name__ == "__main__":
    key = jax.random.PRNGKey(0)
    ks = jax.random.split(key, 9)

    B, C_in, C_out = 2, 8, 16
    H, W = 16, 16
    kernel_size, stride, padding = 3, 1, 1
    groups = C_in                               # depthwise configuration

    x = jax.random.normal(ks[0], (B, C_in, H, W), dtype=jnp.float32)

    wd = 0.1 * jax.random.normal(
        ks[1], (C_in, C_in // groups, kernel_size, kernel_size), dtype=jnp.float32)
    bd = 0.1 * jax.random.normal(ks[2], (C_in,), dtype=jnp.float32)
    gamma = 1.0 + 0.1 * jax.random.normal(ks[3], (C_in,), dtype=jnp.float32)
    beta = 0.1 * jax.random.normal(ks[4], (C_in,), dtype=jnp.float32)
    run_mean = 0.1 * jax.random.normal(ks[5], (C_in,), dtype=jnp.float32)
    run_var = 1.0 + 0.1 * jnp.abs(jax.random.normal(ks[6], (C_in,), dtype=jnp.float32))
    wp = 0.1 * jax.random.normal(ks[7], (C_out, C_in), dtype=jnp.float32)
    bp = 0.1 * jax.random.normal(ks[8], (C_out,), dtype=jnp.float32)

    out = depthwise_next(x, wd, bd, gamma, beta, run_mean, run_var, wp, bp,
                         kernel_size=kernel_size, stride=stride,
                         padding=padding, groups=groups)
    out = jax.block_until_ready(out)

    expected = _reference(x, wd, bd, gamma, beta, run_mean, run_var, wp, bp,
                          stride=stride, padding=padding, groups=groups)
    assert out.shape == (B, C_out, H, W), out.shape
    max_err = float(jnp.max(jnp.abs(out - expected)))
    assert jnp.allclose(out, expected, atol=1e-5, rtol=1e-5), max_err
    print("KERNEL_OK")
</pallas_src>

<mosaic_0001>
module attributes {stable_mosaic.version = 11 : i64} {
  func.func @_depthwise_next_kernel(%arg0: i32, %arg1: memref<9x8x1xf32, #tpu.memory_space<vmem>>, %arg2: memref<16x8xf32, #tpu.memory_space<vmem>>, %arg3: memref<16x1xf32, #tpu.memory_space<vmem>>, %arg4: memref<1x9x8x256xf32, #tpu.memory_space<vmem>>, %arg5: memref<1x16x256xf32, #tpu.memory_space<vmem>>) attributes {dimension_semantics = [#tpu.dimension_semantics<parallel>], iteration_bounds = array<i64: 2>, scalar_prefetch = 0 : i64, scratch_operands = 0 : i64, tpu.core_type = #tpu.core_type<tc>, window_params = [{pipeline_mode = #tpu.pipeline_mode<synchronous>, transform_indices = @transform_0, window_bounds = array<i64: 9, 8, 1>}, {pipeline_mode = #tpu.pipeline_mode<synchronous>, transform_indices = @transform_1, window_bounds = array<i64: 16, 8>}, {pipeline_mode = #tpu.pipeline_mode<synchronous>, transform_indices = @transform_2, window_bounds = array<i64: 16, 1>}, {transform_indices = @transform_3, window_bounds = array<i64: 1, 9, 8, 256>}, {transform_indices = @transform_4, window_bounds = array<i64: 1, 16, 256>}]} {
    %c0 = arith.constant 0 : index
    %c0_0 = arith.constant 0 : index
    %0 = vector.load %arg2[%c0, %c0_0] : memref<16x8xf32, #tpu.memory_space<vmem>>, vector<16x8xf32>
    %c0_1 = arith.constant 0 : index
    %c0_2 = arith.constant 0 : index
    %1 = vector.load %arg3[%c0_1, %c0_2] : memref<16x1xf32, #tpu.memory_space<vmem>>, vector<16x1xf32>
    %c0_3 = arith.constant 0 : index
    %c0_4 = arith.constant 0 : index
    %c0_5 = arith.constant 0 : index
    %2 = vector.load %arg1[%c0_3, %c0_4, %c0_5] : memref<9x8x1xf32, #tpu.memory_space<vmem>>, vector<1x8x1xf32>
    %3 = vector.shape_cast %2 : vector<1x8x1xf32> to vector<8x1xf32>
    %c0_6 = arith.constant 0 : index
    %c0_7 = arith.constant 0 : index
    %c0_8 = arith.constant 0 : index
    %c0_9 = arith.constant 0 : index
    %4 = vector.load %arg4[%c0_6, %c0_7, %c0_8, %c0_9] : memref<1x9x8x256xf32, #tpu.memory_space<vmem>>, vector<1x1x8x256xf32>
    %5 = vector.shape_cast %4 : vector<1x1x8x256xf32> to vector<8x256xf32>
    %6 = vector.broadcast %3 : vector<8x1xf32> to vector<8x256xf32>
    %7 = arith.mulf %6, %5 : vector<8x256xf32>
    %c1 = arith.constant 1 : index
    %c0_10 = arith.constant 0 : index
    %c0_11 = arith.constant 0 : index
    %8 = vector.load %arg1[%c1, %c0_10, %c0_11] : memref<9x8x1xf32, #tpu.memory_space<vmem>>, vector<1x8x1xf32>
    %9 = vector.shape_cast %8 : vector<1x8x1xf32> to vector<8x1xf32>
    %c0_12 = arith.constant 0 : index
    %c1_13 = arith.constant 1 : index
    %c0_14 = arith.constant 0 : index
    %c0_15 = arith.constant 0 : index
    %10 = vector.load %arg4[%c0_12, %c1_13, %c0_14, %c0_15] : memref<1x9x8x256xf32, #tpu.memory_space<vmem>>, vector<1x1x8x256xf32>
    %11 = vector.shape_cast %10 : vector<1x1x8x256xf32> to vector<8x256xf32>
    %12 = vector.broadcast %9 : vector<8x1xf32> to vector<8x256xf32>
    %13 = arith.mulf %12, %11 : vector<8x256xf32>
    %14 = arith.addf %7, %13 : vector<8x256xf32>
    %c2 = arith.constant 2 : index
    %c0_16 = arith.constant 0 : index
    %c0_17 = arith.constant 0 : index
    %15 = vector.load %arg1[%c2, %c0_16, %c0_17] : memref<9x8x1xf32, #tpu.memory_space<vmem>>, vector<1x8x1xf32>
    %16 = vector.shape_cast %15 : vector<1x8x1xf32> to vector<8x1xf32>
    %c0_18 = arith.constant 0 : index
    %c2_19 = arith.constant 2 : index
    %c0_20 = arith.constant 0 : index
    %c0_21 = arith.constant 0 : index
    %17 = vector.load %arg4[%c0_18, %c2_19, %c0_20, %c0_21] : memref<1x9x8x256xf32, #tpu.memory_space<vmem>>, vector<1x1x8x256xf32>
    %18 = vector.shape_cast %17 : vector<1x1x8x256xf32> to vector<8x256xf32>
    %19 = vector.broadcast %16 : vector<8x1xf32> to vector<8x256xf32>
    %20 = arith.mulf %19, %18 : vector<8x256xf32>
    %21 = arith.addf %14, %20 : vector<8x256xf32>
    %c3 = arith.constant 3 : index
    %c0_22 = arith.constant 0 : index
    %c0_23 = arith.constant 0 : index
    %22 = vector.load %arg1[%c3, %c0_22, %c0_23] : memref<9x8x1xf32, #tpu.memory_space<vmem>>, vector<1x8x1xf32>
    %23 = vector.shape_cast %22 : vector<1x8x1xf32> to vector<8x1xf32>
    %c0_24 = arith.constant 0 : index
    %c3_25 = arith.constant 3 : index
    %c0_26 = arith.constant 0 : index
    %c0_27 = arith.constant 0 : index
    %24 = vector.load %arg4[%c0_24, %c3_25, %c0_26, %c0_27] : memref<1x9x8x256xf32, #tpu.memory_space<vmem>>, vector<1x1x8x256xf32>
    %25 = vector.shape_cast %24 : vector<1x1x8x256xf32> to vector<8x256xf32>
    %26 = vector.broadcast %23 : vector<8x1xf32> to vector<8x256xf32>
    %27 = arith.mulf %26, %25 : vector<8x256xf32>
    %28 = arith.addf %21, %27 : vector<8x256xf32>
    %c4 = arith.constant 4 : index
    %c0_28 = arith.constant 0 : index
    %c0_29 = arith.constant 0 : index
    %29 = vector.load %arg1[%c4, %c0_28, %c0_29] : memref<9x8x1xf32, #tpu.memory_space<vmem>>, vector<1x8x1xf32>
    %30 = vector.shape_cast %29 : vector<1x8x1xf32> to vector<8x1xf32>
    %c0_30 = arith.constant 0 : index
    %c4_31 = arith.constant 4 : index
    %c0_32 = arith.constant 0 : index
    %c0_33 = arith.constant 0 : index
    %31 = vector.load %arg4[%c0_30, %c4_31, %c0_32, %c0_33] : memref<1x9x8x256xf32, #tpu.memory_space<vmem>>, vector<1x1x8x256xf32>
    %32 = vector.shape_cast %31 : vector<1x1x8x256xf32> to vector<8x256xf32>
    %33 = vector.broadcast %30 : vector<8x1xf32> to vector<8x256xf32>
    %34 = arith.mulf %33, %32 : vector<8x256xf32>
    %35 = arith.addf %28, %34 : vector<8x256xf32>
    %c5 = arith.constant 5 : index
    %c0_34 = arith.constant 0 : index
    %c0_35 = arith.constant 0 : index
    %36 = vector.load %arg1[%c5, %c0_34, %c0_35] : memref<9x8x1xf32, #tpu.memory_space<vmem>>, vector<1x8x1xf32>
    %37 = vector.shape_cast %36 : vector<1x8x1xf32> to vector<8x1xf32>
    %c0_36 = arith.constant 0 : index
    %c5_37 = arith.constant 5 : index
    %c0_38 = arith.constant 0 : index
    %c0_39 = arith.constant 0 : index
    %38 = vector.load %arg4[%c0_36, %c5_37, %c0_38, %c0_39] : memref<1x9x8x256xf32, #tpu.memory_space<vmem>>, vector<1x1x8x256xf32>
    %39 = vector.shape_cast %38 : vector<1x1x8x256xf32> to vector<8x256xf32>
    %40 = vector.broadcast %37 : vector<8x1xf32> to vector<8x256xf32>
    %41 = arith.mulf %40, %39 : vector<8x256xf32>
    %42 = arith.addf %35, %41 : vector<8x256xf32>
    %c6 = arith.constant 6 : index
    %c0_40 = arith.constant 0 : index
    %c0_41 = arith.constant 0 : index
    %43 = vector.load %arg1[%c6, %c0_40, %c0_41] : memref<9x8x1xf32, #tpu.memory_space<vmem>>, vector<1x8x1xf32>
    %44 = vector.shape_cast %43 : vector<1x8x1xf32> to vector<8x1xf32>
    %c0_42 = arith.constant 0 : index
    %c6_43 = arith.constant 6 : index
    %c0_44 = arith.constant 0 : index
    %c0_45 = arith.constant 0 : index
    %45 = vector.load %arg4[%c0_42, %c6_43, %c0_44, %c0_45] : memref<1x9x8x256xf32, #tpu.memory_space<vmem>>, vector<1x1x8x256xf32>
    %46 = vector.shape_cast %45 : vector<1x1x8x256xf32> to vector<8x256xf32>
    %47 = vector.broadcast %44 : vector<8x1xf32> to vector<8x256xf32>
    %48 = arith.mulf %47, %46 : vector<8x256xf32>
    %49 = arith.addf %42, %48 : vector<8x256xf32>
    %c7 = arith.constant 7 : index
    %c0_46 = arith.constant 0 : index
    %c0_47 = arith.constant 0 : index
    %50 = vector.load %arg1[%c7, %c0_46, %c0_47] : memref<9x8x1xf32, #tpu.memory_space<vmem>>, vector<1x8x1xf32>
    %51 = vector.shape_cast %50 : vector<1x8x1xf32> to vector<8x1xf32>
    %c0_48 = arith.constant 0 : index
    %c7_49 = arith.constant 7 : index
    %c0_50 = arith.constant 0 : index
    %c0_51 = arith.constant 0 : index
    %52 = vector.load %arg4[%c0_48, %c7_49, %c0_50, %c0_51] : memref<1x9x8x256xf32, #tpu.memory_space<vmem>>, vector<1x1x8x256xf32>
    %53 = vector.shape_cast %52 : vector<1x1x8x256xf32> to vector<8x256xf32>
    %54 = vector.broadcast %51 : vector<8x1xf32> to vector<8x256xf32>
    %55 = arith.mulf %54, %53 : vector<8x256xf32>
    %56 = arith.addf %49, %55 : vector<8x256xf32>
    %c8 = arith.constant 8 : index
    %c0_52 = arith.constant 0 : index
    %c0_53 = arith.constant 0 : index
    %57 = vector.load %arg1[%c8, %c0_52, %c0_53] : memref<9x8x1xf32, #tpu.memory_space<vmem>>, vector<1x8x1xf32>
    %58 = vector.shape_cast %57 : vector<1x8x1xf32> to vector<8x1xf32>
    %c0_54 = arith.constant 0 : index
    %c8_55 = arith.constant 8 : index
    %c0_56 = arith.constant 0 : index
    %c0_57 = arith.constant 0 : index
    %59 = vector.load %arg4[%c0_54, %c8_55, %c0_56, %c0_57] : memref<1x9x8x256xf32, #tpu.memory_space<vmem>>, vector<1x1x8x256xf32>
    %60 = vector.shape_cast %59 : vector<1x1x8x256xf32> to vector<8x256xf32>
    %61 = vector.broadcast %58 : vector<8x1xf32> to vector<8x256xf32>
    %62 = arith.mulf %61, %60 : vector<8x256xf32>
    %63 = arith.addf %56, %62 : vector<8x256xf32>
    %64 = vector.extract_strided_slice %0 {offsets = [0, 0], sizes = [16, 1], strides = [1, 1]} : vector<16x8xf32> to vector<16x1xf32>
    %65 = vector.extract_strided_slice %63 {offsets = [0, 0], sizes = [1, 256], strides = [1, 1]} : vector<8x256xf32> to vector<1x256xf32>
    %66 = vector.broadcast %64 : vector<16x1xf32> to vector<16x256xf32>
    %67 = vector.broadcast %65 : vector<1x256xf32> to vector<16x256xf32>
    %68 = arith.mulf %66, %67 : vector<16x256xf32>
    %69 = vector.extract_strided_slice %0 {offsets = [0, 1], sizes = [16, 1], strides = [1, 1]} : vector<16x8xf32> to vector<16x1xf32>
    %70 = vector.extract_strided_slice %63 {offsets = [1, 0], sizes = [1, 256], strides = [1, 1]} : vector<8x256xf32> to vector<1x256xf32>
    %71 = vector.broadcast %69 : vector<16x1xf32> to vector<16x256xf32>
    %72 = vector.broadcast %70 : vector<1x256xf32> to vector<16x256xf32>
    %73 = arith.mulf %71, %72 : vector<16x256xf32>
    %74 = arith.addf %68, %73 : vector<16x256xf32>
    %75 = vector.extract_strided_slice %0 {offsets = [0, 2], sizes = [16, 1], strides = [1, 1]} : vector<16x8xf32> to vector<16x1xf32>
    %76 = vector.extract_strided_slice %63 {offsets = [2, 0], sizes = [1, 256], strides = [1, 1]} : vector<8x256xf32> to vector<1x256xf32>
    %77 = vector.broadcast %75 : vector<16x1xf32> to vector<16x256xf32>
    %78 = vector.broadcast %76 : vector<1x256xf32> to vector<16x256xf32>
    %79 = arith.mulf %77, %78 : vector<16x256xf32>
    %80 = arith.addf %74, %79 : vector<16x256xf32>
    %81 = vector.extract_strided_slice %0 {offsets = [0, 3], sizes = [16, 1], strides = [1, 1]} : vector<16x8xf32> to vector<16x1xf32>
    %82 = vector.extract_strided_slice %63 {offsets = [3, 0], sizes = [1, 256], strides = [1, 1]} : vector<8x256xf32> to vector<1x256xf32>
    %83 = vector.broadcast %81 : vector<16x1xf32> to vector<16x256xf32>
    %84 = vector.broadcast %82 : vector<1x256xf32> to vector<16x256xf32>
    %85 = arith.mulf %83, %84 : vector<16x256xf32>
    %86 = arith.addf %80, %85 : vector<16x256xf32>
    %87 = vector.extract_strided_slice %0 {offsets = [0, 4], sizes = [16, 1], strides = [1, 1]} : vector<16x8xf32> to vector<16x1xf32>
    %88 = vector.extract_strided_slice %63 {offsets = [4, 0], sizes = [1, 256], strides = [1, 1]} : vector<8x256xf32> to vector<1x256xf32>
    %89 = vector.broadcast %87 : vector<16x1xf32> to vector<16x256xf32>
    %90 = vector.broadcast %88 : vector<1x256xf32> to vector<16x256xf32>
    %91 = arith.mulf %89, %90 : vector<16x256xf32>
    %92 = arith.addf %86, %91 : vector<16x256xf32>
    %93 = vector.extract_strided_slice %0 {offsets = [0, 5], sizes = [16, 1], strides = [1, 1]} : vector<16x8xf32> to vector<16x1xf32>
    %94 = vector.extract_strided_slice %63 {offsets = [5, 0], sizes = [1, 256], strides = [1, 1]} : vector<8x256xf32> to vector<1x256xf32>
    %95 = vector.broadcast %93 : vector<16x1xf32> to vector<16x256xf32>
    %96 = vector.broadcast %94 : vector<1x256xf32> to vector<16x256xf32>
    %97 = arith.mulf %95, %96 : vector<16x256xf32>
    %98 = arith.addf %92, %97 : vector<16x256xf32>
    %99 = vector.extract_strided_slice %0 {offsets = [0, 6], sizes = [16, 1], strides = [1, 1]} : vector<16x8xf32> to vector<16x1xf32>
    %100 = vector.extract_strided_slice %63 {offsets = [6, 0], sizes = [1, 256], strides = [1, 1]} : vector<8x256xf32> to vector<1x256xf32>
    %101 = vector.broadcast %99 : vector<16x1xf32> to vector<16x256xf32>
    %102 = vector.broadcast %100 : vector<1x256xf32> to vector<16x256xf32>
    %103 = arith.mulf %101, %102 : vector<16x256xf32>
    %104 = arith.addf %98, %103 : vector<16x256xf32>
    %105 = vector.extract_strided_slice %0 {offsets = [0, 7], sizes = [16, 1], strides = [1, 1]} : vector<16x8xf32> to vector<16x1xf32>
    %106 = vector.extract_strided_slice %63 {offsets = [7, 0], sizes = [1, 256], strides = [1, 1]} : vector<8x256xf32> to vector<1x256xf32>
    %107 = vector.broadcast %105 : vector<16x1xf32> to vector<16x256xf32>
    %108 = vector.broadcast %106 : vector<1x256xf32> to vector<16x256xf32>
    %109 = arith.mulf %107, %108 : vector<16x256xf32>
    %110 = arith.addf %104, %109 : vector<16x256xf32>
    %111 = vector.broadcast %1 : vector<16x1xf32> to vector<16x256xf32>
    %112 = arith.addf %110, %111 : vector<16x256xf32>
    %cst = arith.constant 0.000000e+00 : f32
    %113 = vector.broadcast %cst : f32 to vector<16x256xf32>
    %114 = arith.maximumf %112, %113 : vector<16x256xf32>
    %c0_58 = arith.constant 0 : index
    %c0_59 = arith.constant 0 : index
    %c0_60 = arith.constant 0 : index
    %115 = vector.load %arg5[%c0_58, %c0_59, %c0_60] : memref<1x16x256xf32, #tpu.memory_space<vmem>>, vector<1x16x256xf32>
    %116 = vector.shape_cast %115 : vector<1x16x256xf32> to vector<16x256xf32>
    %117 = vector.shape_cast %114 : vector<16x256xf32> to vector<1x16x256xf32>
    tpu.vector_store %arg5[%c0_58, %c0_59, %c0_60], %117 {strides = array<i32>} : memref<1x16x256xf32, #tpu.memory_space<vmem>>, vector<1x16x256xf32>,
    return
  }
  func.func @transform_0(%arg0: i32) -> (i32, i32, i32) {
    %c0_i32 = arith.constant 0 : i32
    %c0_i32_0 = arith.constant 0 : i32
    %c0_i32_1 = arith.constant 0 : i32
    %c0_i32_2 = arith.constant 0 : i32
    return %c0_i32, %c0_i32_0, %c0_i32_1 : i32, i32, i32
  }
  func.func @transform_1(%arg0: i32) -> (i32, i32) {
    %c0_i32 = arith.constant 0 : i32
    %c0_i32_0 = arith.constant 0 : i32
    %c0_i32_1 = arith.constant 0 : i32
    return %c0_i32, %c0_i32_0 : i32, i32
  }
  func.func @transform_2(%arg0: i32) -> (i32, i32) {
    %c0_i32 = arith.constant 0 : i32
    %c0_i32_0 = arith.constant 0 : i32
    %c0_i32_1 = arith.constant 0 : i32
    return %c0_i32, %c0_i32_0 : i32, i32
  }
  func.func @transform_3(%arg0: i32) -> (i32, i32, i32, i32) {
    %c0_i32 = arith.constant 0 : i32
    %c0_i32_0 = arith.constant 0 : i32
    %c0_i32_1 = arith.constant 0 : i32
    %c0_i32_2 = arith.constant 0 : i32
    return %arg0, %c0_i32, %c0_i32_0, %c0_i32_1 : i32, i32, i32, i32
  }
  func.func @transform_4(%arg0: i32) -> (i32, i32, i32) {
    %c0_i32 = arith.constant 0 : i32
    %c0_i32_0 = arith.constant 0 : i32
    %c0_i32_1 = arith.constant 0 : i32
    return %arg0, %c0_i32, %c0_i32_0 : i32, i32, i32
  }
}

</mosaic_0001>

<bundles_post_ra>
// kernel: tpu_custom_call.1
= control target key start
LH: loop header
LB: loop body
LE: loop exit
PB: predicated region body
PF: predicated region fallthrough
CT: control target
= control target key end

     0   :  { %9 = vsyncpa [#allocation3], 0  ;;  %s1125_s0 = inlined_call_operand.vmem [shape: f32[9,8,1], index: 0, kind: input, shape index: {}]   ;;  %s1126_s1 = inlined_call_operand.vmem [shape: f32[16,8], index: 1, kind: input, shape index: {}]   ;;  %s1127_s2 = inlined_call_operand.vmem [shape: f32[16,1], index: 2, kind: input, shape index: {}]   ;;  %s1128_s3 = inlined_call_operand.hbm [shape: f32[2,9,8,256], index: 3, kind: input, shape index: {}]   ;;  %s1129_s4 = inlined_call_operand.hbm [shape: f32[2,16,256], index: 4, kind: output, shape index: {}]  }
   0x1   :  { %11 = vsyncpa [#allocation3 + $0x1], 0 }
   0x2   :  { %12 = vsyncpa [#allocation4], 0 }
   0x3   :  { %14 = vsyncpa [#allocation4 + $0x1], 0  ;;  %s887_s15 = smov 0   ;;  %s889_s16 = smov 0  }
   0x4   :  { %s891_s17 = smov 0   ;;  %s893_s18 = smov 0  }
   0x5 LB: > { %s908_s19 = sadd.s32 4294967295, %s846_s18   ;;  %s641_s20 = sadd.s32 4294967294, %s846_s18   ;;  %s846_s18 = sphi %s893_s18, %s1143_s18   ;;  %s842_s17 = sphi %s891_s17, %s1142_s17   ;;  %s838_s16 = sphi %s889_s16, %s1141_s16   ;;  %s834_s15 = sphi %s887_s15, %s1140_s15  }
   0x6   : > { %s912_s21 = sadd.s32 1, %s846_s18   ;;  %s90_s22 = sadd.s32 1, %s842_s17 }
   0x7   : > { %s87_s23 = ssub.s32 %s846_s18, %s912_s21  ;;  %p97_p0 = scmp.ne.s32.totalorder %s842_s17, %s838_s16 }
   0x8   : > { %p88_p1 = scmp.eq.s32.totalorder %s87_s23, 0  ;;  %p98_p2 = scmp.eq.s32.totalorder %s846_s18, 0 }
   0x9   : > { %p103_p3 = scmp.ne.s32.totalorder %s838_s16, %s834_s15  ;;  %p104_p4 = scmp.eq.s32.totalorder %s908_s19, 0 }
   0xa   : > { %s924_s24 = scalar_select %p88_p1, %s842_s17, %s90_s22  }
   0xb   : > { %p99_p5 = por %p98_p2, %p97_p0  ;;  %p926_p6 = por %p104_p4, %p103_p3 }
   0xc   : > { %p127_p7 = scmp.eq.s32.totalorder %s908_s19, 1  ;;  %p133_p8 = scmp.eq.s32.totalorder %s641_s20, 1 }
   0xd   : > { %s1132_s25 = scalar_select %p926_p6, 1, 0 }
   0xe   : > { %p692_p10 = scmp.lt.s32.totalorder %s846_s18, 2  ;;  %p933_p11 = por %p127_p7, %p97_p0 }
   0xf   : > { %p937_p12 = por %p133_p8, %p103_p3  ;;  %s162_s28 = sand.u32 1, %s842_s17  }
  0x10   : > { %s1133_s26 = scalar_select %p933_p11, 1, 0 }
  0x11   : > { %s1134_s27 = scalar_select %p937_p12, 1, 0 }
  0x12   : > { %s678_s29 = smul.u32 2304, %s846_s18  ;;  %p948_p13 = pnand %p692_p10, %p99_p5 }
  0x13   : > { %s677_s30 = smul.u32 144, %s162_s28  ;;  %s954_s11 = scalar_lea.sflag [#allocation3], %s162_s28 }
  0x14   : > { %s946_s7 = scalar_lea.hbm %s1128_s3, %s678_s29  ;;  %p756_p1 = pneg %p948_p13 }
  0x15   : > { %s166_s9 = scalar_lea.vmem [#allocation2], %s677_s30  ;;  %s754_s12 = scalar_lea.hbm %s946_s7, 2304 }
  0x16   : > { %s173_s10 = sshll.u32 %s166_s9, 4  ;;  %p755_p0 = scmp.ne.s32.totalorder %s946_s7, %s754_s12  ;;  %s952_s10 = int_to_ptr.vmem [resolvable:$true] %s173_s10 }
  0x17   : > { %s759_s20 = scalar_lea.hbm %s1128_s3, 4608  ;;  %p760_p4 = scmp.lt.s32.totalorder %s946_s7, %s1128_s3 }
  0x18   : > { %p757_p2 = pnand %p756_p1, %p755_p0  ;;  %p761_p5 = scmp.lt.s32.totalorder %s759_s20, %s754_s12 }
  0x1a   : > { %p758_p3 = pneg %p757_p2  ;;  %p762_p7 = por %p761_p5, %p760_p4 }
  0x1c   : > { %p763_p8 = pnand %p762_p7, %p758_p3 }
  0x1e   : > { %766 = shalt.err (!%p763_p8)
}
  0x1f   : > { %s767_s28 = scalar_lea.vmem %s952_s10, 2304  ;;  %s848_s29 = smov [#allocation2]  }
  0x20   : > { %p768_p10 = scmp.ne.s32.totalorder %s952_s10, %s767_s28  ;;  %s772_s30 = sshll.u32 %s848_s29, 4  ;;  %s773_s30 = int_to_ptr.vmem [resolvable:$false] %s772_s30 }
  0x21   : > { %s774_s5 = scalar_lea.vmem %s773_s30, 4608  ;;  %p775_p2 = scmp.lt.s32.totalorder %s952_s10, %s773_s30 }
  0x22   : > { %p770_p9 = pnand %p768_p10, %p756_p1  ;;  %p776_p12 = scmp.lt.s32.totalorder %s774_s5, %s767_s28 }
  0x24   : > { %p771_p0 = pneg %p770_p9  ;;  %p777_p11 = por %p776_p12, %p775_p2 }
  0x26   : > { %p778_p6 = pnand %p777_p11, %p771_p0 }
  0x28   : > { %781 = shalt.err (!%p778_p6)
}
  0x29   : > { %s849_s6 = smov 256   ;;  %s850_s9 = smov 16  }
  0x2a   : > { %687 = dma.hbm_to_vmem [thread:$0]  (!%p948_p13), %s946_s7, 2304, %s952_s10, %s954_s11, %s849_s6, %s849_s6, %s850_s9  }
  0x2b   : > { %p645_p9 = scmp.ge.s32.totalorder %s846_s18, 1  ;;  %p181_p1 = scmp.lt.s32.totalorder %s846_s18, 3 }
  0x2d   : > { %p182_p3 = pnand %p645_p9, %p181_p1 }
  0x2e   : > { %s978_s12 = sand.u32 (!%p182_p3), 1, %s838_s16   ;;  %p1136_p6 = scmp.ne.s32.totalorder (!%p182_p3), %s1132_s25, 0 }
  0x2f   : > { %185 = sbr.rel (%p182_p3) target bundleno = 265 (0x109), region = 36  ;;  %s188_s14 = scalar_lea.sflag (!%p182_p3), [#allocation3], %s978_s12 }
  0x30   : > { %s679_s13 = smul.u32 (!%p182_p3), 144, %s978_s12 }
  0x32   : > { %s982_s20 = scalar_lea.vmem (!%p182_p3), [#allocation2], %s679_s13 }
  0x34   : > { %825 = dma.done.wait (%p1136_p6), %s188_s14, 2304  }
  0x35   : > { %827 = vsyncadd (%p1136_p6), %s188_s14, 4294964992  ;;  %v851_v0 = vmov 0   ;;  %v650_v1 = vld [vmem:[%s1125_s0 + $0x10] sm:$0xff]  ;;  %v220_v2 = vld [vmem:[%s1125_s0] sm:$0xff]  ;;  %v852_v12 = vmov 1   ;;  %v853_v13 = vmov 2  }
  0x36   : > { %739 = vset.pattern.permute.xlu1 %v851_v0  ;;  %738 = vset.pattern.permute.xlu0 %v851_v0  ;;  %v653_v3 = vld [vmem:[%s1125_s0 + $0x18] sm:$0xff]  ;;  %v647_v4 = vld [vmem:[%s1125_s0 + $0x8] sm:$0xff]  ;;  %v656_v6 = vld [vmem:[%s1125_s0 + $0x20] sm:$0xff]  ;;  %v854_v14 = vmov 3   ;;  %v855_v15 = vmov 4   ;;  %v856_v16 = vmov 6  }
  0x37   : > { %251 = vperm.xlu1 %739, %v650_v1   ;;  %225 = vperm.xlu0 %738, %v220_v2   ;;  %v659_v5 = vld [vmem:[%s1125_s0 + $0x28] sm:$0xff]  ;;  %v665_v7 = vld [vmem:[%s1125_s0 + $0x38] sm:$0xff]  ;;  %v662_v8 = vld [vmem:[%s1125_s0 + $0x30] sm:$0xff]  ;;  %v857_v17 = vmov 7   ;;  %v858_v18 = vmov 5   ;;  %s676_s13 = sshll.u32 %s908_s19, 9 }
  0x38   : > { %v668_v9 = vld [vmem:[%s1125_s0 + $0x40] sm:$0xff]  ;;  %v217_v11 = vld [vmem:[%s1126_s1 + $0x8] sm:$0xff]  ;;  %s1082_s8 = scalar_lea.hbm %s1129_s4, %s676_s13  ;;  %s555_s19 = scalar_lea.sflag [#allocation4], %s978_s12 }
  0x39   : > { %v216_v10 = vld [vmem:[%s1126_s1] sm:$0xff]  ;;  %v219_v20 = vld [vmem:[%s1127_s2 + $0x8] sm:$0xff]  ;;  %p1137_p12 = scmp.ne.s32.totalorder %s1133_s26, 0  ;;  %s859_s11 = smov [#allocation5]  }
  0x3a   : > { %v218_v19 = vld [vmem:[%s1127_s2] sm:$0xff]  ;;  %v222_v23 = vld [vmem:[%s982_s20 + $0x8] sm:$0xff]  ;;  %v649_v26 = vld [vmem:[%s982_s20 + $0x18] sm:$0xff]  ;;  %s786_s22 = sshll.u32 %s859_s11, 4  ;;  %s787_s22 = int_to_ptr.vmem [resolvable:$false] %s786_s22 }
  0x3b   : > { %265 = vperm.xlu1 %739, %v653_v3   ;;  %237 = vperm.xlu0 %738, %v647_v4   ;;  %v221_v22 = vld [vmem:[%s982_s20] sm:$0xff]  ;;  %v648_v25 = vld [vmem:[%s982_s20 + $0x10] sm:$0xff]  ;;  %v652_v30 = vld [vmem:[%s982_s20 + $0x28] sm:$0xff]  ;;  %s788_s23 = scalar_lea.vmem %s787_s22, 1024 }
  0x3c   : > { %v651_v29 = vld [vmem:[%s982_s20 + $0x20] sm:$0xff]  ;;  %v654_v39 = vld [vmem:[%s982_s20 + $0x30] sm:$0xff]  ;;  %v655_v40 = vld [vmem:[%s982_s20 + $0x38] sm:$0xff] }
  0x3d   : > { %v657_v44 = vld [vmem:[%s982_s20 + $0x40] sm:$0xff]  ;;  %v658_v45 = vld [vmem:[%s982_s20 + $0x48] sm:$0xff]  ;;  %v660_v54 = vld [vmem:[%s982_s20 + $0x50] sm:$0xff] }
  0x3e   : > { %v661_v55 = vld [vmem:[%s982_s20 + $0x58] sm:$0xff]  ;;  %v663_v59 = vld [vmem:[%s982_s20 + $0x60] sm:$0xff]  ;;  %v664_v60 = vld [vmem:[%s982_s20 + $0x68] sm:$0xff] }
  0x3f   : > { %293 = vperm.xlu1 %739, %v659_v5   ;;  %279 = vperm.xlu0 %738, %v656_v6   ;;  %v666_v5 = vld [vmem:[%s982_s20 + $0x70] sm:$0xff]  ;;  %v667_v6 = vld [vmem:[%s982_s20 + $0x78] sm:$0xff] }
  0x43   : > { %321 = vperm.xlu1 %739, %v665_v7   ;;  %307 = vperm.xlu0 %738, %v662_v8   ;;  %v352_v7 = vlaneseq }
  0x47   : > { %335 = vperm.xlu0 %738, %v668_v9   ;;  %344 = vperm.xlu1 %739, %v216_v10  }
  0x4b   : > { %349 = vperm.xlu0 %738, %v217_v11   ;;  %740 = vset.pattern.permute.xlu1 %v852_v12 }
  0x4c   : > { %365 = vperm.xlu1 %740, %v216_v10  }
  0x4f   : > { %741 = vset.pattern.permute.xlu0 %v852_v12  ;;  %v670_v12 = vld [vmem:[%s982_s20 + $0x88] sm:$0xff] }
  0x50   : > { %369 = vperm.xlu0 %741, %v217_v11   ;;  %742 = vset.pattern.permute.xlu1 %v853_v13 }
  0x51   : > { %389 = vperm.xlu1 %742, %v216_v10  }
  0x54   : > { %743 = vset.pattern.permute.xlu0 %v854_v14 }
  0x55   : > { %413 = vperm.xlu0 %743, %v216_v10   ;;  %393 = vperm.xlu1 %742, %v217_v11  }
  0x59   : > { %746 = vset.pattern.permute.xlu0 %v855_v15  ;;  %744 = vset.pattern.permute.xlu1 %v854_v14 }
  0x5a   : > { %441 = vperm.xlu0 %746, %v217_v11   ;;  %417 = vperm.xlu1 %744, %v217_v11  }
  0x5e   : > { %748 = vset.pattern.permute.xlu0 %v856_v16  ;;  %745 = vset.pattern.permute.xlu1 %v855_v15 }
  0x5f   : > { %485 = vperm.xlu0 %748, %v216_v10   ;;  %437 = vperm.xlu1 %745, %v216_v10  }
  0x63   : > { %751 = vset.pattern.permute.xlu0 %v857_v17  ;;  %747 = vset.pattern.permute.xlu1 %v858_v18 }
  0x64   : > { %513 = vperm.xlu0 %751, %v217_v11   ;;  %461 = vperm.xlu1 %747, %v216_v10  }
  0x68   : > { %465 = vperm.xlu1 %747, %v217_v11   ;;  %753 = vset.pattern.permute.xlu0 %v851_v0 }
  0x6c   : > { %749 = vset.pattern.permute.xlu1 %v856_v16  ;;  %v1045_v16 = vshrl.u32 %v352_v7, 7 }
  0x6d   : > { %489 = vperm.xlu1 %749, %v217_v11   ;;  %v669_v11 = vld [vmem:[%s982_s20 + $0x80] sm:$0xff]  ;;  %s646_s20 = sshll.u32 %s978_s12, 5 }
  0x6e   : > { %s215_s6 = scalar_lea.vmem [#allocation5], %s646_s20 }
  0x6f   : > { %s568_s9 = sshll.u32 %s215_s6, 4  ;;  %s1077_s9 = int_to_ptr.vmem [resolvable:$true] %s568_s9 }
  0x70   : > { %s782_s10 = scalar_lea.vmem %s1077_s9, 512  ;;  %p789_p5 = scmp.lt.s32.totalorder %s1077_s9, %s787_s22 }
  0x71   : > { %750 = vset.pattern.permute.xlu1 %v857_v17  ;;  %p783_p11 = scmp.ne.s32.totalorder %s1077_s9, %s782_s10  ;;  %p790_p7 = scmp.lt.s32.totalorder %s788_s23, %s782_s10 }
  0x72   : > { %509 = vperm.xlu1 %750, %v216_v10  }
  0x73   : > { %p784_p13 = pnand %p783_p11, %p1137_p12  ;;  %p791_p8 = por %p790_p7, %p789_p5 }
  0x75   : > { %p785_p4 = pneg %p784_p13 }
  0x76   : > { %752 = vset.pattern.permute.xlu1 %v851_v0 }
  0x77   : > { %534 = vperm.xlu1 %752, %v218_v19   ;;  %p792_p10 = pnand %p791_p8, %p785_p4 }
  0x7b   : > { %539 = vperm.xlu1 %752, %v219_v20  }
  0xb2   : > { %v252_v21 = vpop.permute.xlu1 %251  ;;  %v226_v24 = vpop.permute.xlu0 %225 }
  0xb3   : > { %v228_v27 = vmul.f32 %v226_v24, %v221_v22  ;;  %v229_v28 = vmul.f32 %v226_v24, %v222_v23  ;;  %v254_v35 = vmul.f32 %v651_v29, %v252_v21  ;;  %v255_v36 = vmul.f32 %v652_v30, %v252_v21 }
  0xb6   : > { %v266_v31 = vpop.permute.xlu1 %265  ;;  %v238_v32 = vpop.permute.xlu0 %237 }
  0xb7   : > { %v240_v33 = vmul.f32 %v648_v25, %v238_v32  ;;  %v241_v34 = vmul.f32 %v649_v26, %v238_v32  ;;  %v268_v46 = vmul.f32 %v654_v39, %v266_v31  ;;  %v269_v47 = vmul.f32 %v655_v40, %v266_v31 }
  0xb8   : > { %v354_v25 = vsub.s32 0, %v1045_v16  ;;  %v374_v26 = vsub.s32 1, %v1045_v16  ;;  %v422_v39 = vsub.s32 3, %v1045_v16 }
  0xb9   : > { %v242_v37 = vadd.f32 %v240_v33, %v228_v27  ;;  %v243_v38 = vadd.f32 %v241_v34, %v229_v28  ;;  %v398_v33 = vsub.s32 2, %v1045_v16 }
  0xba   : > { %v294_v41 = vpop.permute.xlu1 %293  ;;  %v280_v48 = vpop.permute.xlu0 %279 }
  0xbb   : > { %v256_v42 = vadd.f32 %v254_v35, %v242_v37  ;;  %v257_v43 = vadd.f32 %v255_v36, %v243_v38  ;;  %v282_v52 = vmul.f32 %v657_v44, %v280_v48  ;;  %v283_v53 = vmul.f32 %v658_v45, %v280_v48 }
  0xbc   : > { %v296_v61 = vmul.f32 %v660_v54, %v294_v41  ;;  %v297_v62 = vmul.f32 %v661_v55, %v294_v41 }
  0xbd   : > { %v270_v50 = vadd.f32 %v268_v46, %v256_v42  ;;  %v271_v51 = vadd.f32 %v269_v47, %v257_v43  ;;  %v446_v43 = vsub.s32 4, %v1045_v16 }
  0xbe   : > { %v322_v49 = vpop.permute.xlu1 %321  ;;  %v308_v63 = vpop.permute.xlu0 %307 }
  0xbf   : > { %v284_v57 = vadd.f32 %v282_v52, %v270_v50  ;;  %v285_v58 = vadd.f32 %v283_v53, %v271_v51  ;;  %v310_v2 = vmul.f32 %v663_v59, %v308_v63  ;;  %v311_v3 = vmul.f32 %v664_v60, %v308_v63 }
  0xc0   : > { %v324_v14 = vmul.f32 %v666_v5, %v322_v49  ;;  %v325_v15 = vmul.f32 %v667_v6, %v322_v49  ;;  %v494_v51 = vsub.s32 6, %v1045_v16  ;;  %v470_v52 = vsub.s32 5, %v1045_v16 }
  0xc1   : > { %v298_v0 = vadd.f32 %v296_v61, %v284_v57  ;;  %v299_v1 = vadd.f32 %v297_v62, %v285_v58 }
  0xc2   : > { %v345_v56 = vpop.permute.xlu1 %344  ;;  %v336_v10 = vpop.permute.xlu0 %335 }
  0xc3   : > { %v312_v8 = vadd.f32 %v310_v2, %v298_v0  ;;  %v313_v9 = vadd.f32 %v311_v3, %v299_v1  ;;  %v338_v19 = vmul.f32 %v669_v11, %v336_v10  ;;  %v339_v20 = vmul.f32 %v670_v12, %v336_v10 }
  0xc5   : > { %v326_v17 = vadd.f32 %v324_v14, %v312_v8  ;;  %v327_v18 = vadd.f32 %v325_v15, %v313_v9 }
  0xc6   : > { %v350_v22 = vpop.permute.xlu0 %349 }
  0xc7   : > { %v366_v4 = vpop.permute.xlu1 %365  ;;  %v1047_v23 = vadd.f32 %v338_v19, %v326_v17  ;;  %v1049_v24 = vadd.f32 %v339_v20, %v327_v18  ;;  %v518_v20 = vsub.s32 7, %v1045_v16 }
  0xc9   : > { %v355_v28 = vrot.slane %v1047_v23, %v354_v25  ;;  %v359_v29 = vrot.slane %v1049_v24, %v354_v25  ;;  %v375_v30 = vrot.slane %v1047_v23, %v374_v26  ;;  %v379_v31 = vrot.slane %v1049_v24, %v374_v26 }
  0xca   : > { %v399_v40 = vrot.slane %v1047_v23, %v398_v33  ;;  %v403_v41 = vrot.slane %v1049_v24, %v398_v33  ;;  %v423_v49 = vrot.slane %v1047_v23, %v422_v39  ;;  %v427_v50 = vrot.slane %v1049_v24, %v422_v39 }
  0xcb   : > { %v370_v32 = vpop.permute.xlu0 %369  ;;  %v360_v35 = vmul.f32 %v355_v28, %v345_v56  ;;  %v361_v36 = vmul.f32 %v359_v29, %v345_v56  ;;  %v380_v37 = vmul.f32 %v375_v30, %v366_v4  ;;  %v381_v38 = vmul.f32 %v379_v31, %v366_v4 }
  0xcc   : > { %v390_v13 = vpop.permute.xlu1 %389  ;;  %v362_v53 = vmul.f32 %v355_v28, %v350_v22  ;;  %v363_v54 = vmul.f32 %v359_v29, %v350_v22  ;;  %v382_v55 = vmul.f32 %v375_v30, %v370_v32  ;;  %v383_v56 = vmul.f32 %v379_v31, %v370_v32 }
  0xcd   : > { %v384_v44 = vadd.f32 %v380_v37, %v360_v35  ;;  %v385_v45 = vadd.f32 %v381_v38, %v361_v36  ;;  %v404_v46 = vmul.f32 %v399_v40, %v390_v13  ;;  %v405_v47 = vmul.f32 %v403_v41, %v390_v13 }
  0xce   : > { %v447_v59 = vrot.slane %v1047_v23, %v446_v43  ;;  %v451_v60 = vrot.slane %v1049_v24, %v446_v43  ;;  %v471_v5 = vrot.slane %v1047_v23, %v470_v52  ;;  %v475_v6 = vrot.slane %v1049_v24, %v470_v52 }
  0xcf   : > { %v408_v61 = vadd.f32 %v404_v46, %v384_v44  ;;  %v409_v62 = vadd.f32 %v405_v47, %v385_v45  ;;  %v386_v7 = vadd.f32 %v382_v55, %v362_v53  ;;  %v387_v8 = vadd.f32 %v383_v56, %v363_v54 }
  0xd0   : > { %v394_v21 = vpop.permute.xlu1 %393  ;;  %v414_v42 = vpop.permute.xlu0 %413  ;;  %v495_v28 = vrot.slane %v1047_v23, %v494_v51  ;;  %v499_v29 = vrot.slane %v1049_v24, %v494_v51  ;;  %v519_v37 = vrot.slane %v1047_v23, %v518_v20  ;;  %v523_v16 = vrot.slane %v1049_v24, %v518_v20 }
  0xd1   : > { %v428_v57 = vmul.f32 %v423_v49, %v414_v42  ;;  %v429_v58 = vmul.f32 %v427_v50, %v414_v42  ;;  %v406_v63 = vmul.f32 %v399_v40, %v394_v21  ;;  %v407_v0 = vmul.f32 %v403_v41, %v394_v21 }
  0xd3   : > { %v432_v11 = vadd.f32 %v428_v57, %v408_v61  ;;  %v433_v12 = vadd.f32 %v429_v58, %v409_v62  ;;  %v410_v15 = vadd.f32 %v406_v63, %v386_v7  ;;  %v411_v17 = vadd.f32 %v407_v0, %v387_v8 }
  0xd5   : > { %v418_v27 = vpop.permute.xlu1 %417  ;;  %v442_v1 = vpop.permute.xlu0 %441 }
  0xd6   : > { %v430_v9 = vmul.f32 %v423_v49, %v418_v27  ;;  %v431_v10 = vmul.f32 %v427_v50, %v418_v27  ;;  %v454_v31 = vmul.f32 %v447_v59, %v442_v1  ;;  %v455_v32 = vmul.f32 %v451_v60, %v442_v1 }
  0xd8   : > { %v434_v22 = vadd.f32 %v430_v9, %v410_v15  ;;  %v435_v25 = vadd.f32 %v431_v10, %v411_v17 }
  0xda   : > { %v438_v34 = vpop.permute.xlu1 %437  ;;  %v486_v26 = vpop.permute.xlu0 %485  ;;  %v458_v38 = vadd.f32 %v454_v31, %v434_v22  ;;  %v459_v39 = vadd.f32 %v455_v32, %v435_v25 }
  0xdb   : > { %v452_v3 = vmul.f32 %v447_v59, %v438_v34  ;;  %v453_v4 = vmul.f32 %v451_v60, %v438_v34  ;;  %v500_v35 = vmul.f32 %v495_v28, %v486_v26  ;;  %v501_v36 = vmul.f32 %v499_v29, %v486_v26 }
  0xdd   : > { %v456_v18 = vadd.f32 %v452_v3, %v432_v11  ;;  %v457_v19 = vadd.f32 %v453_v4, %v433_v12 }
  0xdf   : > { %v462_v48 = vpop.permute.xlu1 %461  ;;  %v514_v49 = vpop.permute.xlu0 %513 }
  0xe0   : > { %v476_v13 = vmul.f32 %v471_v5, %v462_v48  ;;  %v477_v14 = vmul.f32 %v475_v6, %v462_v48  ;;  %v526_v24 = vmul.f32 %v519_v37, %v514_v49  ;;  %v527_v54 = vmul.f32 %v523_v16, %v514_v49 }
  0xe2   : > { %v480_v30 = vadd.f32 %v476_v13, %v456_v18  ;;  %v481_v27 = vadd.f32 %v477_v14, %v457_v19 }
  0xe3   : > { %v466_v2 = vpop.permute.xlu1 %465 }
  0xe4   : > { %v478_v33 = vmul.f32 %v471_v5, %v466_v2  ;;  %v479_v34 = vmul.f32 %v475_v6, %v466_v2  ;;  %v504_v45 = vadd.f32 %v500_v35, %v480_v30  ;;  %v505_v46 = vadd.f32 %v501_v36, %v481_v27 }
  0xe6   : > { %v482_v47 = vadd.f32 %v478_v33, %v458_v38  ;;  %v483_v48 = vadd.f32 %v479_v34, %v459_v39 }
  0xe8   : > { %v490_v21 = vpop.permute.xlu1 %489 }
  0xe9   : > { %v502_v40 = vmul.f32 %v495_v28, %v490_v21  ;;  %v503_v41 = vmul.f32 %v499_v29, %v490_v21 }
  0xeb   : > { %v506_v52 = vadd.f32 %v502_v40, %v482_v47  ;;  %v507_v23 = vadd.f32 %v503_v41, %v483_v48 }
  0xed   : > { %v510_v42 = vpop.permute.xlu1 %509  ;;  %v530_v59 = vadd.f32 %v526_v24, %v506_v52  ;;  %v531_v60 = vadd.f32 %v527_v54, %v507_v23 }
  0xee   : > { %v524_v43 = vmul.f32 %v519_v37, %v510_v42  ;;  %v525_v44 = vmul.f32 %v523_v16, %v510_v42 }
  0xf0   : > { %v528_v50 = vadd.f32 %v524_v43, %v504_v45  ;;  %v529_v51 = vadd.f32 %v525_v44, %v505_v46 }
  0xf2   : > { %v535_v53 = vpop.permute.xlu1 %534 }
  0xf3   : > { %v542_v55 = vadd.f32 %v535_v53, %v528_v50  ;;  %v543_v56 = vadd.f32 %v535_v53, %v529_v51 }
  0xf5   : > { %v546_v57 = vmax.f32 %v542_v55, 0.0  ;;  %v547_v58 = vmax.f32 %v543_v56, 0.0 }
  0xf6   : > { %v540_v61 = vpop.permute.xlu1 %539 }
  0xf7   : > { %550 = vst [vmem:[%s215_s6] sm:$0xff] %v546_v57  ;;  %551 = vst [vmem:[%s215_s6 + $0x8] sm:$0xff] %v547_v58  ;;  %v544_v62 = vadd.f32 %v540_v61, %v530_v59  ;;  %v545_v63 = vadd.f32 %v540_v61, %v531_v60 }
  0xf9   : > { %v548_v0 = vmax.f32 %v544_v62, 0.0  ;;  %v549_v1 = vmax.f32 %v545_v63, 0.0 }
  0xfb   : > { %552 = vst [vmem:[%s215_s6 + $0x10] sm:$0xff] %v548_v0  ;;  %553 = vst [vmem:[%s215_s6 + $0x18] sm:$0xff] %v549_v1 }
  0xfc   : > { %795 = shalt.err (!%p792_p10)
}
  0xfd   : > { %s796_s28 = scalar_lea.hbm %s1082_s8, 512  ;;  %s800_s30 = scalar_lea.hbm %s1129_s4, 1024 }
  0xfe   : > { %p797_p0 = scmp.ne.s32.totalorder %s1082_s8, %s796_s28  ;;  %p801_p1 = scmp.lt.s32.totalorder %s1082_s8, %s1129_s4 }
  0xff   : > { %p802_p3 = scmp.lt.s32.totalorder %s800_s30, %s796_s28 }
 0x100   : > { %p798_p2 = pnand %p797_p0, %p1137_p12 }
 0x101   : > { %p803_p6 = por %p802_p3, %p801_p1 }
 0x102   : > { %p799_p9 = pneg %p798_p2 }
 0x104   : > { %p804_p11 = pnand %p803_p6, %p799_p9 }
 0x106   : > { %807 = shalt.err (!%p804_p11)
}
 0x107   : > { %s860_s6 = smov 256   ;;  %s861_s13 = smov 16  }
 0x108   : > { %682 = dma.vmem_to_hbm [thread:$0]  (%p1137_p12), %s1077_s9, 512, %s1082_s8, %s555_s19, %s860_s6, %s860_s6, %s861_s13  }
 0x109 PF: > { %s583_s14 = sand.u32 1, %s834_s15   ;;  %p1138_p13 = scmp.ne.s32.totalorder %s1134_s27, 0 }
 0x10a   : > { %p1139_p4 = scmp.ge.s32.totalorder %s846_s18, 2  ;;  %s584_s7 = scalar_lea.sflag [#allocation4], %s583_s14 }
 0x10c   : > { %p689_p5 = pnand %p1139_p4, %p1138_p13 }
 0x10e   : > { %p690_p7 = pneg %p689_p5 }
 0x110   : > { %829 = dma.done.wait (%p690_p7), %s584_s7, 512  }
 0x111   : > { %831 = vsyncadd (%p690_p7), %s584_s7, 4294966784  ;;  %p17_p8 = scmp.ge.s32.totalorder %s912_s21, 4   ;;  %s1140_s15 = smov %s838_s16 }
 0x112   : > { %s1141_s16 = smov %s842_s17  ;;  %s1142_s17 = smov %s924_s24 }
 0x113   : > { %s1143_s18 = smov %s912_s21  ;;  %19 = sbr.rel (!%p17_p8) target bundleno = 5 (0x5), region = 97 }
 0x118   :  { %589 = vsyncpa [#allocation3], 1 }
 0x119   :  { %591 = vsyncpa [#allocation3 + $0x1], 1 }
 0x11a   :  { %592 = vsyncpa [#allocation4], 1 }
 0x11b   :  { %594 = vsyncpa [#allocation4 + $0x1], 1 }

</bundles_post_ra>
